<compile_context>
chip_gen: v6e
topology: v6e:2x2x1
jax: 0.10.0
libtpu: 0.0.40
codegen_flags: <defaults>
</compile_context>

<pallas_src>
import functools

import numpy as np
import jax
import jax.numpy as jnp
from jax.experimental import pallas as pl
from jax.experimental.pallas import tpu as pltpu


# ----------------------------------------------------------------------------
# Fused kernel: in-kernel 3x3 patch formation (9 shifted lane slices + masks)
#               -> conv matmuls (bf16 in, f32 acc) -> bias -> ReLU
#               -> global average pool -> Linear -> Sigmoid.
# Grid: (B,).  Everything for one image stays resident in VMEM / vregs.
# ----------------------------------------------------------------------------
def _make_fused_kernel(c_in, c_out, h, w, halo):
    hw = h * w
    inv_hw = 1.0 / hw

    def kernel(x_ref, m_ref, wk_ref, cb_ref, fwt_ref, fb_ref, o_ref):
        # x_ref : [1, C_in, HW + 2*halo] bf16  (flat spatial, zero halo)
        # m_ref : [9, 1, HW]  bf16  boundary masks per 3x3 tap
        # wk_ref: [9, C_out, C_in] bf16  per-tap conv weights
        # cb_ref: [C_out, 1] f32, fwt_ref: [N, C_out] f32, fb_ref: [N, 1] f32
        acc = jnp.zeros((c_out, hw), jnp.float32)
        for k in range(9):                       # static unroll: 9 conv taps
            dh, dw = k // 3 - 1, k % 3 - 1
            off = halo + dh * w + dw             # static in-bounds lane offset
            xs = x_ref[0, :, pl.ds(off, hw)]     # [C_in, HW] shifted tap (bf16)
            xs = xs * m_ref[k]                   # zero taps outside the image
            acc = acc + jnp.dot(wk_ref[k], xs,
                                preferred_element_type=jnp.float32)
        relu = jnp.maximum(acc + cb_ref[...], 0.0)            # bias + ReLU
        feats = jnp.sum(relu, axis=1, keepdims=True) * inv_hw  # GAP -> [C_out,1]
        logits = jnp.dot(fwt_ref[...], feats,
                         preferred_element_type=jnp.float32) + fb_ref[...]
        o_ref[0] = jax.nn.sigmoid(logits)                      # [N, 1]

    return kernel


@jax.jit
def finetune_byol_forward(x, conv_w, conv_b, fc_w, fc_b):
    """x: [B, C_in, H, W] (NCHW).  Returns sigmoid(Linear(GAP(ReLU(conv3x3(x)))))."""
    B, C_in, H, W = x.shape
    HW = H * W
    C_out = conv_w.shape[1]
    N = fc_w.shape[1]
    halo = W + 1

    # Activation stream: raw input, flattened spatially, bf16, with a (W+1)
    # zero halo so every 3x3 tap is a static, in-bounds lane slice in-kernel.
    # (No im2col, no K padding -> minimal HBM bytes on the only big stream.)
    x_flat = x.astype(jnp.bfloat16).reshape(B, C_in, HW)
    x_flat = jnp.pad(x_flat, ((0, 0), (0, 0), (halo, halo)))

    # Per-tap boundary masks [9, 1, HW] (bf16 0/1): tap (dh,dw) is valid iff
    # the source pixel lies inside the image.  Tiny, constant-folded.
    hh = np.arange(HW) // W
    ww = np.arange(HW) % W
    masks_np = np.stack([
        ((hh + dh >= 0) & (hh + dh < H) & (ww + dw >= 0) & (ww + dw < W))
        for dh in (-1, 0, 1) for dw in (-1, 0, 1)
    ]).astype(np.float32).reshape(9, 1, HW)
    masks = jnp.asarray(masks_np, dtype=jnp.bfloat16)

    # Conv weights regrouped per tap: wk[k, cout, cin], k = kh*3 + kw (matches
    # conv_w's (c_in, kh, kw) row order).  Classifier stays f32.
    wk = conv_w.reshape(C_in, 9, C_out).transpose(1, 2, 0).astype(jnp.bfloat16)
    cb = conv_b.reshape(C_out, 1).astype(jnp.float32)
    fwt = fc_w.T.astype(jnp.float32)                      # [N, C_out]
    fb = fc_b.reshape(N, 1).astype(jnp.float32)

    kernel = _make_fused_kernel(C_in, C_out, H, W, halo)

    cost = pl.CostEstimate(
        flops=B * (2 * 9 * C_out * C_in * HW + 2 * C_out * HW + 2 * N * C_out),
        transcendentals=B * N,
        bytes_accessed=(x_flat.size * 2 + masks.size * 2 + wk.size * 2
                        + (cb.size + fwt.size + fb.size + B * N) * 4),
    )

    out = pl.pallas_call(
        kernel,
        out_shape=jax.ShapeDtypeStruct((B, N, 1), jnp.float32),
        grid_spec=pltpu.PrefetchScalarGridSpec(
            num_scalar_prefetch=0,
            grid=(B,),
            in_specs=[
                pl.BlockSpec((1, C_in, HW + 2 * halo), lambda b: (b, 0, 0)),
                pl.BlockSpec((9, 1, HW), lambda b: (0, 0, 0)),
                pl.BlockSpec((9, C_out, C_in), lambda b: (0, 0, 0)),
                pl.BlockSpec((C_out, 1), lambda b: (0, 0)),
                pl.BlockSpec((N, C_out), lambda b: (0, 0)),
                pl.BlockSpec((N, 1), lambda b: (0, 0)),
            ],
            out_specs=pl.BlockSpec((1, N, 1), lambda b: (b, 0, 0)),
        ),
        compiler_params=pltpu.CompilerParams(
            dimension_semantics=("parallel",),   # batch across cores (v7x)
        ),
        cost_estimate=cost,
    )(x_flat, masks, wk, cb, fwt, fb)

    return out[:, :, 0]


# ----------------------------------------------------------------------------
# Pure-JAX reference (independent formulation via lax.conv_general_dilated) to
# validate the in-kernel patch formation and the fused pipeline end-to-end.
# ----------------------------------------------------------------------------
def reference_forward(x, conv_w, conv_b, fc_w, fc_b):
    B, C_in, H, W = x.shape
    C_out = conv_w.shape[1]
    w_hwio = conv_w.reshape(C_in, 3, 3, C_out).transpose(1, 2, 0, 3)   # HWIO
    y = jax.lax.conv_general_dilated(
        x, w_hwio, window_strides=(1, 1), padding="SAME",
        dimension_numbers=("NCHW", "HWIO", "NCHW"),
        precision=jax.lax.Precision.HIGHEST)                           # [B,C_out,H,W]
    y = jnp.maximum(y + conv_b[0][None, :, None, None], 0.0)
    feats = jnp.mean(y, axis=(2, 3))                                   # [B, C_out]
    logits = feats @ fc_w + fc_b
    return jax.nn.sigmoid(logits)


if __name__ == "__main__":
    # Small shapes consistent with the module's forward.
    B, C_in, H, W = 2, 4, 16, 16
    in_features = 32          # encoder.out_features
    num_classes = 10
    kH = kW = 3

    key = jax.random.PRNGKey(0)
    kx, kcw, kcb, kfw, kfb = jax.random.split(key, 5)

    x = jax.random.normal(kx, (B, C_in, H, W), dtype=jnp.float32)

    # Synthetic encoder conv parameters: rows ordered (c_in, kh, kw) -> C_out.
    conv_w = jax.random.normal(kcw, (C_in * kH * kW, in_features),
                               dtype=jnp.float32) * 0.1
    conv_b = jax.random.normal(kcb, (1, in_features), dtype=jnp.float32) * 0.01

    # Classifier: nn.Linear(in_features, num_classes); stored as W^T [in, out].
    fc_w = jax.random.normal(kfw, (in_features, num_classes),
                             dtype=jnp.float32) * 0.1
    fc_b = jax.random.normal(kfb, (1, num_classes), dtype=jnp.float32) * 0.01

    out = finetune_byol_forward(x, conv_w, conv_b, fc_w, fc_b)
    out = jax.block_until_ready(out)

    ref = reference_forward(x, conv_w, conv_b, fc_w, fc_b)

    assert out.shape == (B, num_classes)
    assert bool(jnp.all((out >= 0.0) & (out <= 1.0)))     # sigmoid range sanity
    # bf16 conv data path vs f32 HIGHEST reference -> 1e-2 tolerance (intentional).
    assert bool(jnp.allclose(out, ref, atol=1e-2, rtol=1e-2)), (
        f"max abs err {float(jnp.max(jnp.abs(out - ref)))}")
    print("KERNEL_OK")
</pallas_src>

<mosaic_0001>
module attributes {stable_mosaic.version = 11 : i64} {
  func.func @kernel(%arg0: i32, %arg1: memref<1x4x290xbf16, #tpu.memory_space<vmem>>, %arg2: memref<9x1x256xbf16, #tpu.memory_space<vmem>>, %arg3: memref<9x32x4xbf16, #tpu.memory_space<vmem>>, %arg4: memref<32x1xf32, #tpu.memory_space<vmem>>, %arg5: memref<10x32xf32, #tpu.memory_space<vmem>>, %arg6: memref<10x1xf32, #tpu.memory_space<vmem>>, %arg7: memref<1x10x1xf32, #tpu.memory_space<vmem>>) attributes {dimension_semantics = [#tpu.dimension_semantics<parallel>], iteration_bounds = array<i64: 2>, scalar_prefetch = 0 : i64, scratch_operands = 0 : i64, tpu.core_type = #tpu.core_type<tc>, window_params = [{transform_indices = @transform_0, window_bounds = array<i64: 1, 4, 290>}, {pipeline_mode = #tpu.pipeline_mode<synchronous>, transform_indices = @transform_1, window_bounds = array<i64: 9, 1, 256>}, {pipeline_mode = #tpu.pipeline_mode<synchronous>, transform_indices = @transform_2, window_bounds = array<i64: 9, 32, 4>}, {pipeline_mode = #tpu.pipeline_mode<synchronous>, transform_indices = @transform_3, window_bounds = array<i64: 32, 1>}, {pipeline_mode = #tpu.pipeline_mode<synchronous>, transform_indices = @transform_4, window_bounds = array<i64: 10, 32>}, {pipeline_mode = #tpu.pipeline_mode<synchronous>, transform_indices = @transform_5, window_bounds = array<i64: 10, 1>}, {transform_indices = @transform_6, window_bounds = array<i64: 1, 10, 1>}]} {
    %cst = arith.constant 0.000000e+00 : f32
    %0 = vector.broadcast %cst : f32 to vector<32x256xf32>
    %c0 = arith.constant 0 : index
    %c0_0 = arith.constant 0 : index
    %c0_1 = arith.constant 0 : index
    %1 = vector.load %arg1[%c0, %c0_0, %c0_1] : memref<1x4x290xbf16, #tpu.memory_space<vmem>>, vector<1x4x256xbf16>
    %2 = vector.shape_cast %1 : vector<1x4x256xbf16> to vector<4x256xbf16>
    %c0_2 = arith.constant 0 : index
    %c0_3 = arith.constant 0 : index
    %c0_4 = arith.constant 0 : index
    %3 = vector.load %arg2[%c0_2, %c0_3, %c0_4] : memref<9x1x256xbf16, #tpu.memory_space<vmem>>, vector<1x1x256xbf16>
    %4 = vector.shape_cast %3 : vector<1x1x256xbf16> to vector<1x256xbf16>
    %5 = vector.broadcast %4 : vector<1x256xbf16> to vector<4x256xbf16>
    %6 = arith.mulf %2, %5 : vector<4x256xbf16>
    %c0_5 = arith.constant 0 : index
    %c0_6 = arith.constant 0 : index
    %c0_7 = arith.constant 0 : index
    %7 = vector.load %arg3[%c0_5, %c0_6, %c0_7] : memref<9x32x4xbf16, #tpu.memory_space<vmem>>, vector<1x32x4xbf16>
    %8 = vector.shape_cast %7 : vector<1x32x4xbf16> to vector<32x4xbf16>
    %cst_8 = arith.constant dense<0.000000e+00> : vector<32x256xf32>
    %9 = tpu.matmul %8, %6, %cst_8 {dimension_numbers = #tpu.dot_dimension_numbers<[1], [0], [0], [1], [0, 0, 1, 1], [], []>} : vector<32x4xbf16>, vector<4x256xbf16>, vector<32x256xf32> -> vector<32x256xf32>
    %10 = arith.addf %0, %9 : vector<32x256xf32>
    %c0_9 = arith.constant 0 : index
    %c0_10 = arith.constant 0 : index
    %c1 = arith.constant 1 : index
    %11 = vector.load %arg1[%c0_9, %c0_10, %c1] : memref<1x4x290xbf16, #tpu.memory_space<vmem>>, vector<1x4x256xbf16>
    %12 = vector.shape_cast %11 : vector<1x4x256xbf16> to vector<4x256xbf16>
    %c1_11 = arith.constant 1 : index
    %c0_12 = arith.constant 0 : index
    %c0_13 = arith.constant 0 : index
    %13 = vector.load %arg2[%c1_11, %c0_12, %c0_13] : memref<9x1x256xbf16, #tpu.memory_space<vmem>>, vector<1x1x256xbf16>
    %14 = vector.shape_cast %13 : vector<1x1x256xbf16> to vector<1x256xbf16>
    %15 = vector.broadcast %14 : vector<1x256xbf16> to vector<4x256xbf16>
    %16 = arith.mulf %12, %15 : vector<4x256xbf16>
    %c1_14 = arith.constant 1 : index
    %c0_15 = arith.constant 0 : index
    %c0_16 = arith.constant 0 : index
    %17 = vector.load %arg3[%c1_14, %c0_15, %c0_16] : memref<9x32x4xbf16, #tpu.memory_space<vmem>>, vector<1x32x4xbf16>
    %18 = vector.shape_cast %17 : vector<1x32x4xbf16> to vector<32x4xbf16>
    %cst_17 = arith.constant dense<0.000000e+00> : vector<32x256xf32>
    %19 = tpu.matmul %18, %16, %cst_17 {dimension_numbers = #tpu.dot_dimension_numbers<[1], [0], [0], [1], [0, 0, 1, 1], [], []>} : vector<32x4xbf16>, vector<4x256xbf16>, vector<32x256xf32> -> vector<32x256xf32>
    %20 = arith.addf %10, %19 : vector<32x256xf32>
    %c0_18 = arith.constant 0 : index
    %c0_19 = arith.constant 0 : index
    %c2 = arith.constant 2 : index
    %21 = vector.load %arg1[%c0_18, %c0_19, %c2] : memref<1x4x290xbf16, #tpu.memory_space<vmem>>, vector<1x4x256xbf16>
    %22 = vector.shape_cast %21 : vector<1x4x256xbf16> to vector<4x256xbf16>
    %c2_20 = arith.constant 2 : index
    %c0_21 = arith.constant 0 : index
    %c0_22 = arith.constant 0 : index
    %23 = vector.load %arg2[%c2_20, %c0_21, %c0_22] : memref<9x1x256xbf16, #tpu.memory_space<vmem>>, vector<1x1x256xbf16>
    %24 = vector.shape_cast %23 : vector<1x1x256xbf16> to vector<1x256xbf16>
    %25 = vector.broadcast %24 : vector<1x256xbf16> to vector<4x256xbf16>
    %26 = arith.mulf %22, %25 : vector<4x256xbf16>
    %c2_23 = arith.constant 2 : index
    %c0_24 = arith.constant 0 : index
    %c0_25 = arith.constant 0 : index
    %27 = vector.load %arg3[%c2_23, %c0_24, %c0_25] : memref<9x32x4xbf16, #tpu.memory_space<vmem>>, vector<1x32x4xbf16>
    %28 = vector.shape_cast %27 : vector<1x32x4xbf16> to vector<32x4xbf16>
    %cst_26 = arith.constant dense<0.000000e+00> : vector<32x256xf32>
    %29 = tpu.matmul %28, %26, %cst_26 {dimension_numbers = #tpu.dot_dimension_numbers<[1], [0], [0], [1], [0, 0, 1, 1], [], []>} : vector<32x4xbf16>, vector<4x256xbf16>, vector<32x256xf32> -> vector<32x256xf32>
    %30 = arith.addf %20, %29 : vector<32x256xf32>
    %c0_27 = arith.constant 0 : index
    %c0_28 = arith.constant 0 : index
    %c16 = arith.constant 16 : index
    %31 = vector.load %arg1[%c0_27, %c0_28, %c16] : memref<1x4x290xbf16, #tpu.memory_space<vmem>>, vector<1x4x256xbf16>
    %32 = vector.shape_cast %31 : vector<1x4x256xbf16> to vector<4x256xbf16>
    %c3 = arith.constant 3 : index
    %c0_29 = arith.constant 0 : index
    %c0_30 = arith.constant 0 : index
    %33 = vector.load %arg2[%c3, %c0_29, %c0_30] : memref<9x1x256xbf16, #tpu.memory_space<vmem>>, vector<1x1x256xbf16>
    %34 = vector.shape_cast %33 : vector<1x1x256xbf16> to vector<1x256xbf16>
    %35 = vector.broadcast %34 : vector<1x256xbf16> to vector<4x256xbf16>
    %36 = arith.mulf %32, %35 : vector<4x256xbf16>
    %c3_31 = arith.constant 3 : index
    %c0_32 = arith.constant 0 : index
    %c0_33 = arith.constant 0 : index
    %37 = vector.load %arg3[%c3_31, %c0_32, %c0_33] : memref<9x32x4xbf16, #tpu.memory_space<vmem>>, vector<1x32x4xbf16>
    %38 = vector.shape_cast %37 : vector<1x32x4xbf16> to vector<32x4xbf16>
    %cst_34 = arith.constant dense<0.000000e+00> : vector<32x256xf32>
    %39 = tpu.matmul %38, %36, %cst_34 {dimension_numbers = #tpu.dot_dimension_numbers<[1], [0], [0], [1], [0, 0, 1, 1], [], []>} : vector<32x4xbf16>, vector<4x256xbf16>, vector<32x256xf32> -> vector<32x256xf32>
    %40 = arith.addf %30, %39 : vector<32x256xf32>
    %c0_35 = arith.constant 0 : index
    %c0_36 = arith.constant 0 : index
    %c17 = arith.constant 17 : index
    %41 = vector.load %arg1[%c0_35, %c0_36, %c17] : memref<1x4x290xbf16, #tpu.memory_space<vmem>>, vector<1x4x256xbf16>
    %42 = vector.shape_cast %41 : vector<1x4x256xbf16> to vector<4x256xbf16>
    %c4 = arith.constant 4 : index
    %c0_37 = arith.constant 0 : index
    %c0_38 = arith.constant 0 : index
    %43 = vector.load %arg2[%c4, %c0_37, %c0_38] : memref<9x1x256xbf16, #tpu.memory_space<vmem>>, vector<1x1x256xbf16>
    %44 = vector.shape_cast %43 : vector<1x1x256xbf16> to vector<1x256xbf16>
    %45 = vector.broadcast %44 : vector<1x256xbf16> to vector<4x256xbf16>
    %46 = arith.mulf %42, %45 : vector<4x256xbf16>
    %c4_39 = arith.constant 4 : index
    %c0_40 = arith.constant 0 : index
    %c0_41 = arith.constant 0 : index
    %47 = vector.load %arg3[%c4_39, %c0_40, %c0_41] : memref<9x32x4xbf16, #tpu.memory_space<vmem>>, vector<1x32x4xbf16>
    %48 = vector.shape_cast %47 : vector<1x32x4xbf16> to vector<32x4xbf16>
    %cst_42 = arith.constant dense<0.000000e+00> : vector<32x256xf32>
    %49 = tpu.matmul %48, %46, %cst_42 {dimension_numbers = #tpu.dot_dimension_numbers<[1], [0], [0], [1], [0, 0, 1, 1], [], []>} : vector<32x4xbf16>, vector<4x256xbf16>, vector<32x256xf32> -> vector<32x256xf32>
    %50 = arith.addf %40, %49 : vector<32x256xf32>
    %c0_43 = arith.constant 0 : index
    %c0_44 = arith.constant 0 : index
    %c18 = arith.constant 18 : index
    %51 = vector.load %arg1[%c0_43, %c0_44, %c18] : memref<1x4x290xbf16, #tpu.memory_space<vmem>>, vector<1x4x256xbf16>
    %52 = vector.shape_cast %51 : vector<1x4x256xbf16> to vector<4x256xbf16>
    %c5 = arith.constant 5 : index
    %c0_45 = arith.constant 0 : index
    %c0_46 = arith.constant 0 : index
    %53 = vector.load %arg2[%c5, %c0_45, %c0_46] : memref<9x1x256xbf16, #tpu.memory_space<vmem>>, vector<1x1x256xbf16>
    %54 = vector.shape_cast %53 : vector<1x1x256xbf16> to vector<1x256xbf16>
    %55 = vector.broadcast %54 : vector<1x256xbf16> to vector<4x256xbf16>
    %56 = arith.mulf %52, %55 : vector<4x256xbf16>
    %c5_47 = arith.constant 5 : index
    %c0_48 = arith.constant 0 : index
    %c0_49 = arith.constant 0 : index
    %57 = vector.load %arg3[%c5_47, %c0_48, %c0_49] : memref<9x32x4xbf16, #tpu.memory_space<vmem>>, vector<1x32x4xbf16>
    %58 = vector.shape_cast %57 : vector<1x32x4xbf16> to vector<32x4xbf16>
    %cst_50 = arith.constant dense<0.000000e+00> : vector<32x256xf32>
    %59 = tpu.matmul %58, %56, %cst_50 {dimension_numbers = #tpu.dot_dimension_numbers<[1], [0], [0], [1], [0, 0, 1, 1], [], []>} : vector<32x4xbf16>, vector<4x256xbf16>, vector<32x256xf32> -> vector<32x256xf32>
    %60 = arith.addf %50, %59 : vector<32x256xf32>
    %c0_51 = arith.constant 0 : index
    %c0_52 = arith.constant 0 : index
    %c32 = arith.constant 32 : index
    %61 = vector.load %arg1[%c0_51, %c0_52, %c32] : memref<1x4x290xbf16, #tpu.memory_space<vmem>>, vector<1x4x256xbf16>
    %62 = vector.shape_cast %61 : vector<1x4x256xbf16> to vector<4x256xbf16>
    %c6 = arith.constant 6 : index
    %c0_53 = arith.constant 0 : index
    %c0_54 = arith.constant 0 : index
    %63 = vector.load %arg2[%c6, %c0_53, %c0_54] : memref<9x1x256xbf16, #tpu.memory_space<vmem>>, vector<1x1x256xbf16>
    %64 = vector.shape_cast %63 : vector<1x1x256xbf16> to vector<1x256xbf16>
    %65 = vector.broadcast %64 : vector<1x256xbf16> to vector<4x256xbf16>
    %66 = arith.mulf %62, %65 : vector<4x256xbf16>
    %c6_55 = arith.constant 6 : index
    %c0_56 = arith.constant 0 : index
    %c0_57 = arith.constant 0 : index
    %67 = vector.load %arg3[%c6_55, %c0_56, %c0_57] : memref<9x32x4xbf16, #tpu.memory_space<vmem>>, vector<1x32x4xbf16>
    %68 = vector.shape_cast %67 : vector<1x32x4xbf16> to vector<32x4xbf16>
    %cst_58 = arith.constant dense<0.000000e+00> : vector<32x256xf32>
    %69 = tpu.matmul %68, %66, %cst_58 {dimension_numbers = #tpu.dot_dimension_numbers<[1], [0], [0], [1], [0, 0, 1, 1], [], []>} : vector<32x4xbf16>, vector<4x256xbf16>, vector<32x256xf32> -> vector<32x256xf32>
    %70 = arith.addf %60, %69 : vector<32x256xf32>
    %c0_59 = arith.constant 0 : index
    %c0_60 = arith.constant 0 : index
    %c33 = arith.constant 33 : index
    %71 = vector.load %arg1[%c0_59, %c0_60, %c33] : memref<1x4x290xbf16, #tpu.memory_space<vmem>>, vector<1x4x256xbf16>
    %72 = vector.shape_cast %71 : vector<1x4x256xbf16> to vector<4x256xbf16>
    %c7 = arith.constant 7 : index
    %c0_61 = arith.constant 0 : index
    %c0_62 = arith.constant 0 : index
    %73 = vector.load %arg2[%c7, %c0_61, %c0_62] : memref<9x1x256xbf16, #tpu.memory_space<vmem>>, vector<1x1x256xbf16>
    %74 = vector.shape_cast %73 : vector<1x1x256xbf16> to vector<1x256xbf16>
    %75 = vector.broadcast %74 : vector<1x256xbf16> to vector<4x256xbf16>
    %76 = arith.mulf %72, %75 : vector<4x256xbf16>
    %c7_63 = arith.constant 7 : index
    %c0_64 = arith.constant 0 : index
    %c0_65 = arith.constant 0 : index
    %77 = vector.load %arg3[%c7_63, %c0_64, %c0_65] : memref<9x32x4xbf16, #tpu.memory_space<vmem>>, vector<1x32x4xbf16>
    %78 = vector.shape_cast %77 : vector<1x32x4xbf16> to vector<32x4xbf16>
    %cst_66 = arith.constant dense<0.000000e+00> : vector<32x256xf32>
    %79 = tpu.matmul %78, %76, %cst_66 {dimension_numbers = #tpu.dot_dimension_numbers<[1], [0], [0], [1], [0, 0, 1, 1], [], []>} : vector<32x4xbf16>, vector<4x256xbf16>, vector<32x256xf32> -> vector<32x256xf32>
    %80 = arith.addf %70, %79 : vector<32x256xf32>
    %c0_67 = arith.constant 0 : index
    %c0_68 = arith.constant 0 : index
    %c34 = arith.constant 34 : index
    %81 = vector.load %arg1[%c0_67, %c0_68, %c34] : memref<1x4x290xbf16, #tpu.memory_space<vmem>>, vector<1x4x256xbf16>
    %82 = vector.shape_cast %81 : vector<1x4x256xbf16> to vector<4x256xbf16>
    %c8 = arith.constant 8 : index
    %c0_69 = arith.constant 0 : index
    %c0_70 = arith.constant 0 : index
    %83 = vector.load %arg2[%c8, %c0_69, %c0_70] : memref<9x1x256xbf16, #tpu.memory_space<vmem>>, vector<1x1x256xbf16>
    %84 = vector.shape_cast %83 : vector<1x1x256xbf16> to vector<1x256xbf16>
    %85 = vector.broadcast %84 : vector<1x256xbf16> to vector<4x256xbf16>
    %86 = arith.mulf %82, %85 : vector<4x256xbf16>
    %c8_71 = arith.constant 8 : index
    %c0_72 = arith.constant 0 : index
    %c0_73 = arith.constant 0 : index
    %87 = vector.load %arg3[%c8_71, %c0_72, %c0_73] : memref<9x32x4xbf16, #tpu.memory_space<vmem>>, vector<1x32x4xbf16>
    %88 = vector.shape_cast %87 : vector<1x32x4xbf16> to vector<32x4xbf16>
    %cst_74 = arith.constant dense<0.000000e+00> : vector<32x256xf32>
    %89 = tpu.matmul %88, %86, %cst_74 {dimension_numbers = #tpu.dot_dimension_numbers<[1], [0], [0], [1], [0, 0, 1, 1], [], []>} : vector<32x4xbf16>, vector<4x256xbf16>, vector<32x256xf32> -> vector<32x256xf32>
    %90 = arith.addf %80, %89 : vector<32x256xf32>
    %c0_75 = arith.constant 0 : index
    %c0_76 = arith.constant 0 : index
    %91 = vector.load %arg4[%c0_75, %c0_76] : memref<32x1xf32, #tpu.memory_space<vmem>>, vector<32x1xf32>
    %92 = vector.broadcast %91 : vector<32x1xf32> to vector<32x256xf32>
    %93 = arith.addf %90, %92 : vector<32x256xf32>
    %cst_77 = arith.constant 0.000000e+00 : f32
    %94 = vector.broadcast %cst_77 : f32 to vector<32x256xf32>
    %95 = arith.maximumf %93, %94 : vector<32x256xf32>
    %cst_78 = arith.constant dense<0.000000e+00> : vector<32xf32>
    %96 = vector.multi_reduction <add>, %95, %cst_78 [1] : vector<32x256xf32> to vector<32xf32>
    %97 = vector.shape_cast %96 : vector<32xf32> to vector<32x1xf32>
    %cst_79 = arith.constant 3.906250e-03 : f32
    %98 = vector.broadcast %cst_79 : f32 to vector<32x1xf32>
    %99 = arith.mulf %97, %98 : vector<32x1xf32>
    %c0_80 = arith.constant 0 : index
    %c0_81 = arith.constant 0 : index
    %100 = vector.load %arg5[%c0_80, %c0_81] : memref<10x32xf32, #tpu.memory_space<vmem>>, vector<10x32xf32>
    %cst_82 = arith.constant dense<0.000000e+00> : vector<10x1xf32>
    %101 = tpu.matmul %100, %99, %cst_82 {dimension_numbers = #tpu.dot_dimension_numbers<[1], [0], [0], [1], [0, 0, 1, 1], [], []>} : vector<10x32xf32>, vector<32x1xf32>, vector<10x1xf32> -> vector<10x1xf32>
    %c0_83 = arith.constant 0 : index
    %c0_84 = arith.constant 0 : index
    %102 = vector.load %arg6[%c0_83, %c0_84] : memref<10x1xf32, #tpu.memory_space<vmem>>, vector<10x1xf32>
    %103 = arith.addf %101, %102 : vector<10x1xf32>
    %104 = arith.negf %103 : vector<10x1xf32>
    %105 = math.exp %104 : vector<10x1xf32>
    %cst_85 = arith.constant 1.000000e+00 : f32
    %106 = vector.broadcast %cst_85 : f32 to vector<10x1xf32>
    %107 = arith.addf %106, %105 : vector<10x1xf32>
    %108 = arith.divf %106, %107 : vector<10x1xf32>
    %c0_86 = arith.constant 0 : index
    %c0_87 = arith.constant 0 : index
    %c0_88 = arith.constant 0 : index
    %109 = vector.load %arg7[%c0_86, %c0_87, %c0_88] : memref<1x10x1xf32, #tpu.memory_space<vmem>>, vector<1x10x1xf32>
    %110 = vector.shape_cast %109 : vector<1x10x1xf32> to vector<10x1xf32>
    %111 = vector.shape_cast %108 : vector<10x1xf32> to vector<1x10x1xf32>
    tpu.vector_store %arg7[%c0_86, %c0_87, %c0_88], %111 {strides = array<i32>} : memref<1x10x1xf32, #tpu.memory_space<vmem>>, vector<1x10x1xf32>,
    return
  }
  func.func @transform_0(%arg0: i32) -> (i32, i32, i32) {
    %c0_i32 = arith.constant 0 : i32
    %c0_i32_0 = arith.constant 0 : i32
    %c0_i32_1 = arith.constant 0 : i32
    return %arg0, %c0_i32, %c0_i32_0 : i32, i32, i32
  }
  func.func @transform_1(%arg0: i32) -> (i32, i32, i32) {
    %c0_i32 = arith.constant 0 : i32
    %c0_i32_0 = arith.constant 0 : i32
    %c0_i32_1 = arith.constant 0 : i32
    %c0_i32_2 = arith.constant 0 : i32
    return %c0_i32, %c0_i32_0, %c0_i32_1 : i32, i32, i32
  }
  func.func @transform_2(%arg0: i32) -> (i32, i32, i32) {
    %c0_i32 = arith.constant 0 : i32
    %c0_i32_0 = arith.constant 0 : i32
    %c0_i32_1 = arith.constant 0 : i32
    %c0_i32_2 = arith.constant 0 : i32
    return %c0_i32, %c0_i32_0, %c0_i32_1 : i32, i32, i32
  }
  func.func @transform_3(%arg0: i32) -> (i32, i32) {
    %c0_i32 = arith.constant 0 : i32
    %c0_i32_0 = arith.constant 0 : i32
    %c0_i32_1 = arith.constant 0 : i32
    return %c0_i32, %c0_i32_0 : i32, i32
  }
  func.func @transform_4(%arg0: i32) -> (i32, i32) {
    %c0_i32 = arith.constant 0 : i32
    %c0_i32_0 = arith.constant 0 : i32
    %c0_i32_1 = arith.constant 0 : i32
    return %c0_i32, %c0_i32_0 : i32, i32
  }
  func.func @transform_5(%arg0: i32) -> (i32, i32) {
    %c0_i32 = arith.constant 0 : i32
    %c0_i32_0 = arith.constant 0 : i32
    %c0_i32_1 = arith.constant 0 : i32
    return %c0_i32, %c0_i32_0 : i32, i32
  }
  func.func @transform_6(%arg0: i32) -> (i32, i32, i32) {
    %c0_i32 = arith.constant 0 : i32
    %c0_i32_0 = arith.constant 0 : i32
    %c0_i32_1 = arith.constant 0 : i32
    return %arg0, %c0_i32, %c0_i32_0 : i32, i32, i32
  }
}

</mosaic_0001>

<bundles_post_ra>
// kernel: finetune_byol_forward.1
= control target key start
LH: loop header
LB: loop body
LE: loop exit
PB: predicated region body
PF: predicated region fallthrough
CT: control target
= control target key end

     0   :  { %s2213_s21 = smov 0   ;;  %s2496_s0 = inlined_call_operand.vmem [shape: bf16[2,4,290], index: 0, kind: input, shape index: {}]   ;;  %s2497_s1 = inlined_call_operand.vmem [shape: bf16[9,1,256], index: 1, kind: input, shape index: {}]   ;;  %s2498_s2 = inlined_call_operand.vmem [shape: bf16[9,32,4], index: 2, kind: input, shape index: {}]   ;;  %s2499_s3 = inlined_call_operand.vmem [shape: f32[32,1], index: 3, kind: input, shape index: {}]   ;;  %s2500_s4 = inlined_call_operand.vmem [shape: f32[10,32], index: 4, kind: input, shape index: {}]   ;;  %s2501_s5 = inlined_call_operand.vmem [shape: f32[10,1], index: 5, kind: input, shape index: {}]   ;;  %s2502_s6 = inlined_call_operand.vmem [shape: f32[2,10,1], index: 6, kind: output, shape index: {}]  }
   0x1 LB: > { %s1967_s22 = sadd.s32 4294967295, %s2157_s21   ;;  %p1971_p0 = scmp.ge.s32.totalorder %s2157_s21, 1  ;;  %s2157_s21 = sphi %s2213_s21, %s16_s21  }
   0x2   : > { %p212_p1 = scmp.lt.s32.totalorder %s2157_s21, 3 }
   0x4   : > { %p213_p2 = pnand %p1971_p0, %p212_p1 }
   0x6   : > { %216 = sbr.rel (%p213_p2) target bundleno = 925 (0x39d), region = 44 }
   0xb   : > { %v267_v0 = vlaneseq  ;;  %v2159_v1 = vmov 1966171168   ;;  %v2160_v3 = vmov 1983009808   ;;  %s2161_s15 = smov 1   ;;  %s2162_s16 = smov 16  }
   0xc   : > { %v265_v2 = vunpack.c.l.s4 %v2159_v1  ;;  %v296_v4 = vunpack.c.l.s4 %v2160_v3  ;;  %v1977_v5 = vld.sshfl [vmem:[%s2497_s1 + $0x2] sm:$0x11 pattern:$0x75316420]  ;;  %s2163_s17 = smov 2   ;;  %s2164_s18 = smov 17  }
   0xd   : > { %v268_v6 = vshrl.u32 %v267_v0, 7  ;;  %v1993_v7 = vld.sshfl [vmem:[%s2497_s1 + $0x4] sm:$0x11 pattern:$0x75316420]  ;;  %v319_v10 = vcombine.high %v1977_v5, %v1977_v5  ;;  %s2165_s19 = smov 18  }
   0xe   : > { %v266_v8 = vunpack.c.0.s8 %v265_v2  ;;  %v297_v9 = vunpack.c.0.s8 %v296_v4  ;;  %v568_v11 = vcombine.high %v1993_v7, %v1993_v7  ;;  %v2004_v12 = vld.sshfl [vmem:[%s2497_s1 + $0x6] sm:$0x11 pattern:$0x75316420]  ;;  %s2166_s20 = smov 32   ;;  %s2167_s23 = smov 34  }
   0xf   : > { %v739_v13 = vcombine.high %v2004_v12, %v2004_v12  ;;  %v2015_v14 = vld.sshfl [vmem:[%s2497_s1 + $0x8] sm:$0x11 pattern:$0x75316420]  ;;  %v2238_v18 = vsub.s32 0, %v268_v6  ;;  %s2168_s24 = smov 33  }
  0x10   : > { %v2233_v15 = vsub.s32 %v266_v8, %v268_v6  ;;  %v910_v16 = vcombine.high %v2015_v14, %v2015_v14  ;;  %v2026_v17 = vld.sshfl [vmem:[%s2497_s1 + $0xa] sm:$0x11 pattern:$0x75316420]  ;;  %v2240_v19 = vsub.s32 %v297_v9, %v268_v6  ;;  %p242_p3 = scmp.lt.s32.totalorder %s1967_s22, 1  ;;  %vm361_vm0 = vcmask 7168  }
  0x11   : > { %v1081_v20 = vcombine.high %v2026_v17, %v2026_v17  ;;  %v2037_v33 = vld.sshfl [vmem:[%s2497_s1 + $0xc] sm:$0x11 pattern:$0x75316420]  ;;  %vm610_vm1 = vcmask 15360   ;;  %vm781_vm2 = vcmask 130048  }
  0x12   : > { %v326_v21 = vrot.slane %v1977_v5, %v2233_v15  ;;  %v333_v22 = vrot.slane %v319_v10, %v2233_v15  ;;  %v575_v23 = vrot.slane %v1993_v7, %v2233_v15  ;;  %v582_v24 = vrot.slane %v568_v11, %v2233_v15  ;;  %v2059_v46 = vld.sshfl [vmem:[%s2497_s1 + $0x10] sm:$0x11 pattern:$0x75316420]  ;;  %s2508_s22 = smov (!%p242_p3, %s1967_s22), 1  ;;  %s2170_s29 = smov 127  }
  0x13   : > { %v746_v25 = vrot.slane %v2004_v12, %v2233_v15  ;;  %v753_v26 = vrot.slane %v739_v13, %v2233_v15  ;;  %v917_v27 = vrot.slane %v2015_v14, %v2233_v15  ;;  %v924_v28 = vrot.slane %v910_v16, %v2233_v15  ;;  %v2048_v59 = vld.sshfl [vmem:[%s2497_s1 + $0xe] sm:$0x11 pattern:$0x75316420]  ;;  %s2095_s25 = smul.u32 6, %s2508_s22  ;;  %s2171_s30 = smov 126  }
  0x14   : > { %v335_v29 = vpack.i.b16 %v326_v21, %v326_v21  ;;  %v342_v30 = vpack.i.b16 %v333_v22, %v333_v22  ;;  %v584_v31 = vpack.i.b16 %v575_v23, %v575_v23  ;;  %v591_v32 = vpack.i.b16 %v582_v24, %v582_v24  ;;  %s2172_s7 = smov 112   ;;  %s2173_s8 = smov 111  }
  0x15   : > { %v755_v34 = vpack.i.b16 %v746_v25, %v746_v25  ;;  %v762_v35 = vpack.i.b16 %v753_v26, %v753_v26  ;;  %v926_v36 = vpack.i.b16 %v917_v27, %v917_v27  ;;  %v933_v37 = vpack.i.b16 %v924_v28, %v924_v28  ;;  %s2301_s28 = scalar_lea.vmem %s2496_s0, %s2095_s25  ;;  %s2174_s9 = smov 110  }
  0x16   : > { %v340_v38 = vrot.slane %v335_v29, %v2238_v18  ;;  %v347_v39 = vrot.slane %v342_v30, %v2238_v18  ;;  %v589_v40 = vrot.slane %v584_v31, %v2238_v18  ;;  %v596_v41 = vrot.slane %v591_v32, %v2238_v18  ;;  %v308_v31 = vld [vmem:[%s2301_s28] sm:$0x3f]  ;;  %s2175_s10 = smov 96   ;;  %s2176_s11 = smov 95  }
  0x17   : > { %v760_v42 = vrot.slane %v755_v34, %v2238_v18  ;;  %v767_v43 = vrot.slane %v762_v35, %v2238_v18  ;;  %v931_v44 = vrot.slane %v926_v36, %v2238_v18  ;;  %v938_v45 = vrot.slane %v933_v37, %v2238_v18  ;;  %s2177_s12 = smov 94   ;;  %s2075_s25 = sshll.u32 %s2508_s22, 4 }
  0x18   : > { %v350_v47 = vcombine.low %v340_v38, %v347_v39  ;;  %v599_v48 = vcombine.low %v589_v40, %v596_v41  ;;  %v1088_v49 = vrot.slane %v2026_v17, %v2233_v15  ;;  %v1095_v50 = vrot.slane %v1081_v20, %v2233_v15  ;;  %v557_v38 = vld [vmem:[%s2301_s28] sm:$0x3f] }
  0x19   : > { %v770_v51 = vcombine.low %v760_v42, %v767_v43  ;;  %v941_v52 = vcombine.low %v931_v44, %v938_v45  ;;  %v1252_v53 = vcombine.high %v2037_v33, %v2037_v33  ;;  %v1259_v54 = vrot.slane %v2037_v33, %v2233_v15 }
  0x1a   : > { %v357_v55 = vrot.slane %v350_v47, %v2240_v19  ;;  %v606_v56 = vrot.slane %v599_v48, %v2240_v19  ;;  %v1097_v57 = vpack.i.b16 %v1088_v49, %v1088_v49  ;;  %v1104_v58 = vpack.i.b16 %v1095_v50, %v1095_v50  ;;  %v728_v48 = vld [vmem:[%s2301_s28] sm:$0x3f] }
  0x1b   : > { %v777_v60 = vrot.slane %v770_v51, %v2240_v19  ;;  %v948_v61 = vrot.slane %v941_v52, %v2240_v19  ;;  %v1266_v62 = vrot.slane %v1252_v53, %v2233_v15  ;;  %v1268_v63 = vpack.i.b16 %v1259_v54, %v1259_v54  ;;  %v899_v53 = vld [vmem:[%s2301_s28] sm:$0x3f] }
  0x1c   : > { %358 = vrot.lane.b32.xlu0 %v357_v55, %s2161_s15  ;;  %v1102_v0 = vrot.slane %v1097_v57, %v2238_v18  ;;  %v1109_v1 = vrot.slane %v1104_v58, %v2238_v18  ;;  %v1594_v2 = vcombine.high %v2059_v46, %v2059_v46  ;;  %v1601_v3 = vrot.slane %v2059_v46, %v2233_v15 }
  0x1d   : > { %778 = vrot.lane.b32.xlu1 %v777_v60, %s2162_s16  ;;  %v1273_v4 = vrot.slane %v1268_v63, %v2238_v18  ;;  %v1275_v5 = vpack.i.b16 %v1266_v62, %v1266_v62  ;;  %v1423_v6 = vcombine.high %v2048_v59, %v2048_v59  ;;  %v1430_v7 = vrot.slane %v2048_v59, %v2233_v15 }
  0x1e   : > { %v1112_v8 = vcombine.low %v1102_v0, %v1109_v1  ;;  %v1608_v9 = vrot.slane %v1594_v2, %v2233_v15  ;;  %v1610_v10 = vpack.i.b16 %v1601_v3, %v1601_v3  ;;  %v2169_v35 = vmov 0   ;;  %v1070_v3 = vld [vmem:[%s2301_s28] sm:$0x3f] }
  0x1f   : > { %v1280_v11 = vrot.slane %v1275_v5, %v2238_v18  ;;  %v1437_v12 = vrot.slane %v1423_v6, %v2233_v15  ;;  %v1439_v13 = vpack.i.b16 %v1430_v7, %v1430_v7  ;;  %452 = vmatprep.mubr.bf16.mxu0 %v2169_v35  ;;  %462 = vmatprep.mubr.bf16.mxu1 %v2169_v35  ;;  %vm952_vm3 = vcmask 138240   ;;  %v1241_v7 = vld [vmem:[%s2301_s28] sm:$0x3f] }
  0x20   : > { %607 = vrot.lane.b32.xlu0 %v606_v56, %s2163_s17  ;;  %v1119_v14 = vrot.slane %v1112_v8, %v2240_v19  ;;  %v1615_v16 = vrot.slane %v1610_v10, %v2238_v18  ;;  %v1617_v17 = vpack.i.b16 %v1608_v9, %v1608_v9  ;;  %2124 = vset.pattern.permute.xlu1 %v2169_v35  ;;  %vm1123_vm4 = vcmask 146432  }
  0x21   : > { %949 = vrot.lane.b32.xlu1 %v948_v61, %s2164_s18  ;;  %v1283_v20 = vcombine.low %v1273_v4, %v1280_v11  ;;  %v1444_v21 = vrot.slane %v1439_v13, %v2238_v18  ;;  %v1446_v22 = vpack.i.b16 %v1437_v12, %v1437_v12  ;;  %2123 = vset.pattern.permute.xlu0 %v2169_v35  ;;  %vm1294_vm5 = vcmask 261120  }
  0x22   : > { %v1622_v23 = vrot.slane %v1617_v17, %v2238_v18  ;;  %vm1465_vm6 = vcmask 269312   ;;  %vm1636_vm7 = vcmask 277504   ;;  %vm403_vm8 = vcmask 1039360  }
  0x23   : > { %v1290_v24 = vrot.slane %v1283_v20, %v2240_v19  ;;  %v1451_v25 = vrot.slane %v1446_v22, %v2238_v18  ;;  %vm413_vm9 = vcmask 1041408   ;;  %vm652_vm10 = vcmask 1031168  }
  0x24   : > { %1120 = vrot.lane.b32.xlu0 %v1119_v14, %s2165_s19  ;;  %v1625_v26 = vcombine.low %v1615_v16, %v1622_v23  ;;  %vm406_vm11 = vcmask 31744   ;;  %vm823_vm12 = vcmask 916480   ;;  %vm994_vm13 = vcmask 908288  }
  0x25   : > { %1291 = vrot.lane.b32.xlu1 %v1290_v24, %s2166_s20  ;;  %v1454_v27 = vcombine.low %v1444_v21, %v1451_v25  ;;  %v1412_v24 = vld [vmem:[%s2301_s28] sm:$0x3f]  ;;  %vm1165_vm14 = vcmask 900096   ;;  %vm1336_vm15 = vcmask 785408  }
  0x26   : > { %v1632_v28 = vrot.slane %v1625_v26, %v2240_v19 }
  0x27   : > { %v1461_v29 = vrot.slane %v1454_v27, %v2240_v19 }
  0x29   : > { %1633 = vrot.lane.b32.xlu1 %v1632_v28, %s2167_s23  ;;  %1462 = vrot.lane.b32.xlu0 %v1461_v29, %s2168_s24  ;;  %v1583_v28 = vld [vmem:[%s2301_s28] sm:$0x3f] }
  0x8e   : > { %v359_v30 = vpop.permute.xlu0 %358 }
  0x8f   : > { %v360_v32 = vrot.slane %v359_v30, 6  ;;  %v779_v33 = vpop.permute.xlu1 %778 }
  0x90   : > { %v780_v40 = vrot.slane %v779_v33, 6 }
  0x91   : > { %v362_v34 = vsel %vm361_vm0, %v360_v32, %v359_v30 }
  0x92   : > { %v364_v36 = vmul.bf16 %v362_v34, %v308_v31  ;;  %v608_v37 = vpop.permute.xlu0 %607  ;;  %v782_v49 = vsel %vm781_vm2, %v780_v40, %v779_v33  ;;  %vm1678_vm2 = vcmask 769024  }
  0x93   : > { %v609_v39 = vrot.slane %v608_v37, 6  ;;  %v950_v41 = vpop.permute.xlu1 %949  ;;  %v784_v55 = vmul.bf16 %v782_v49, %v728_v48 }
  0x94   : > { %v381_v42 = vcombine.high %v364_v36, %v364_v36  ;;  %v388_v43 = vrot.slane %v364_v36, %v2240_v19  ;;  %v951_v45 = vrot.slane %v950_v41, 6 }
  0x95   : > { %v611_v44 = vsel %vm610_vm1, %v609_v39, %v608_v37  ;;  %v801_v60 = vcombine.high %v784_v55, %v784_v55  ;;  %v808_v61 = vrot.slane %v784_v55, %v2240_v19  ;;  %vm1507_vm1 = vcmask 777216  }
  0x96   : > { %v613_v46 = vmul.bf16 %v611_v44, %v557_v38  ;;  %397 = vrot.lane.b32.xlu0 %v388_v43, %s2170_s29  ;;  %v396_v47 = vcombine.high %v388_v43, %v388_v43  ;;  %v395_v51 = vrot.slane %v381_v42, %v2240_v19  ;;  %v953_v54 = vsel %vm952_vm3, %v951_v45, %v950_v41  ;;  %v1121_v59 = vpop.permute.xlu0 %1120  ;;  %v1757_v43 = vld [vmem:[%s2499_s3 + $0x18] sm:$0xff]  ;;  %v1756_v44 = vld [vmem:[%s2499_s3 + $0x10] sm:$0xff]  ;;  %v1754_v45 = vld [vmem:[%s2499_s3] sm:$0xff] }
  0x97   : > { %v955_v57 = vmul.bf16 %v953_v54, %v899_v53  ;;  %v1292_v62 = vpop.permute.xlu1 %1291  ;;  %v1122_v63 = vrot.slane %v1121_v59, 6  ;;  %v815_v2 = vrot.slane %v801_v60, %v2240_v19  ;;  %v816_v6 = vcombine.high %v808_v61, %v808_v61 }
  0x98   : > { %v630_v50 = vcombine.high %v613_v46, %v613_v46  ;;  %399 = vrot.lane.b32.xlu1 %v396_v47, %s2170_s29  ;;  %v637_v52 = vrot.slane %v613_v46, %v2240_v19  ;;  %v1293_v1 = vrot.slane %v1292_v62, 6  ;;  %v1755_v46 = vld [vmem:[%s2499_s3 + $0x8] sm:$0xff]  ;;  %v1975_v47 = vld.sshfl [vmem:[%s2497_s1] sm:$0x11 pattern:$0x75316420] }
  0x99   : > { %v979_v0 = vrot.slane %v955_v57, %v2240_v19  ;;  %v1124_v4 = vsel %vm1123_vm4, %v1122_v63, %v1121_v59  ;;  %v972_v5 = vcombine.high %v955_v57, %v955_v57  ;;  %v263_v48 = vcombine.high %v1975_v47, %v1975_v47  ;;  %v253_v57 = vld [vmem:[%s2301_s28] sm:$0xf]  ;;  %s251_s28 = scalar_lea.vmem %s2502_s6, %s2075_s25 }
  0x9a   : > { %401 = vrot.lane.b32.xlu0 %v395_v51, %s2170_s29  ;;  %v645_v56 = vcombine.high %v637_v52, %v637_v52  ;;  %v644_v58 = vrot.slane %v630_v50, %v2240_v19  ;;  %v1295_v8 = vsel %vm1294_vm5, %v1293_v1, %v1292_v62  ;;  %v1126_v9 = vmul.bf16 %v1124_v4, %v1070_v3 }
  0x9b   : > { %v987_v10 = vcombine.high %v979_v0, %v979_v0  ;;  %v1297_v11 = vmul.bf16 %v1295_v8, %v1241_v7  ;;  %v986_v12 = vrot.slane %v972_v5, %v2240_v19  ;;  %v1463_v13 = vpop.permute.xlu0 %1462  ;;  %v1634_v17 = vpop.permute.xlu1 %1633  ;;  %v270_v49 = vrot.slane %v1975_v47, %v2233_v15 }
  0x9c   : > { %646 = vrot.lane.b32.xlu1 %v637_v52, %s2171_s30  ;;  %v1143_v14 = vcombine.high %v1126_v9, %v1126_v9  ;;  %v1150_v16 = vrot.slane %v1126_v9, %v2240_v19  ;;  %v1464_v20 = vrot.slane %v1463_v13, 6  ;;  %v1635_v22 = vrot.slane %v1634_v17, 6 }
  0x9d   : > { %v1321_v21 = vrot.slane %v1297_v11, %v2240_v19  ;;  %v1314_v26 = vcombine.high %v1297_v11, %v1297_v11  ;;  %v277_v50 = vrot.slane %v263_v48, %v2233_v15  ;;  %v279_v51 = vpack.i.b16 %v270_v49, %v270_v49  ;;  %v2127_v11 = vld [vmem:[%s2498_s2] sm:$0xff]  }
  0x9e   : > { %648 = vrot.lane.b32.xlu0 %v645_v56, %s2171_s30  ;;  %v1157_v23 = vrot.slane %v1143_v14, %v2240_v19  ;;  %v1466_v25 = vsel %vm1465_vm6, %v1464_v20, %v1463_v13  ;;  %v1158_v27 = vcombine.high %v1150_v16, %v1150_v16  ;;  %v1637_v29 = vsel %vm1636_vm7, %v1635_v22, %v1634_v17 }
  0x9f   : > { %v1468_v30 = vmul.bf16 %v1466_v25, %v1412_v24  ;;  %v1329_v31 = vcombine.high %v1321_v21, %v1321_v21  ;;  %v1639_v32 = vmul.bf16 %v1637_v29, %v1583_v28  ;;  %v1328_v33 = vrot.slane %v1314_v26, %v2240_v19  ;;  %v2129_v24 = vld [vmem:[%s2498_s2 + $0x8] sm:$0xff]  }
  0xa0   : > { %650 = vrot.lane.b32.xlu1 %v644_v58, %s2171_s30  ;;  %v286_v52 = vpack.i.b16 %v277_v50, %v277_v50  ;;  %v284_v53 = vrot.slane %v279_v51, %v2238_v18  ;;  %v2130_v25 = vld [vmem:[%s2498_s2 + $0x28] sm:$0xff]   ;;  %vm1910_vm3 = vcmask 1024  }
  0xa1   : > { %v1485_v34 = vcombine.high %v1468_v30, %v1468_v30  ;;  %v1492_v36 = vrot.slane %v1468_v30, %v2240_v19  ;;  %v1663_v37 = vrot.slane %v1639_v32, %v2240_v19  ;;  %v1656_v39 = vcombine.high %v1639_v32, %v1639_v32  ;;  %v2131_v32 = vld [vmem:[%s2498_s2 + $0x30] sm:$0xff]  }
  0xa2   : > { %817 = vrot.lane.b32.xlu0 %v808_v61, %s2172_s7  ;;  %v291_v54 = vrot.slane %v286_v52, %v2238_v18 }
  0xa3   : > { %v1499_v38 = vrot.slane %v1485_v34, %v2240_v19  ;;  %v1500_v40 = vcombine.high %v1492_v36, %v1492_v36  ;;  %v1671_v41 = vcombine.high %v1663_v37, %v1663_v37  ;;  %v1670_v42 = vrot.slane %v1656_v39, %v2240_v19 }
  0xa4   : > { %988 = vrot.lane.b32.xlu1 %v979_v0, %s2173_s8  ;;  %v294_v55 = vcombine.low %v284_v53, %v291_v54  ;;  %v2135_v54 = vld [vmem:[%s2498_s2 + $0x50] sm:$0xff]  }
  0xa6   : > { %821 = vrot.lane.b32.xlu0 %v815_v2, %s2172_s7  ;;  %v301_v56 = vrot.slane %v294_v55, %v2240_v19  ;;  %v2125_v2 = vld [vmem:[%s2498_s2 + $0x10] sm:$0xff]   ;;  %v2136_v55 = vld [vmem:[%s2498_s2 + $0x60] sm:$0xff]  }
  0xa8   : > { %819 = vrot.lane.b32.xlu1 %v816_v6, %s2172_s7  ;;  %v303_v58 = vmul.bf16 %v301_v56, %v253_v57 }
  0xaa   : > { %990 = vrot.lane.b32.xlu0 %v987_v10, %s2173_s8  ;;  %v490_v60 = vrot.slane %v303_v58, %v2240_v19  ;;  %v2126_v19 = vld [vmem:[%s2498_s2 + $0x18] sm:$0xff]  }
  0xac   : > { %992 = vrot.lane.b32.xlu1 %v986_v12, %s2173_s8  ;;  %v491_v15 = vcombine.high %v490_v60, %v490_v60  ;;  %v499_v4 = vsel %vm413_vm9, %v490_v60, 0  ;;  %v2128_v12 = vld [vmem:[%s2498_s2 + $0x20] sm:$0xff]   ;;  %v2138_v60 = vld [vmem:[%s2498_s2 + $0x68] sm:$0xff]  }
  0xae   : > { %1159 = vrot.lane.b32.xlu0 %v1150_v16, %s2174_s9 }
  0xb0   : > { %1330 = vrot.lane.b32.xlu1 %v1321_v21, %s2175_s10 }
  0xb2   : > { %1163 = vrot.lane.b32.xlu0 %v1157_v23, %s2174_s9 }
  0xb4   : > { %1161 = vrot.lane.b32.xlu1 %v1158_v27, %s2174_s9 }
  0xb6   : > { %1332 = vrot.lane.b32.xlu0 %v1329_v31, %s2175_s10 }
  0xb8   : > { %1334 = vrot.lane.b32.xlu1 %v1328_v33, %s2175_s10  ;;  %v2132_v33 = vld [vmem:[%s2498_s2 + $0x40] sm:$0xff]  }
  0xba   : > { %1501 = vrot.lane.b32.xlu0 %v1492_v36, %s2176_s11 }
  0xbc   : > { %1672 = vrot.lane.b32.xlu1 %v1663_v37, %s2177_s12 }
  0xbe   : > { %1505 = vrot.lane.b32.xlu0 %v1499_v38, %s2176_s11 }
  0xc0   : > { %1503 = vrot.lane.b32.xlu1 %v1500_v40, %s2176_s11 }
  0xc2   : > { %1674 = vrot.lane.b32.xlu0 %v1671_v41, %s2177_s12 }
  0xc4   : > { %1676 = vrot.lane.b32.xlu1 %v1670_v42, %s2177_s12 }
  0xc6   : > { %1775 = vperm.xlu0 %2123, %v1757_v43  }
  0xc8   : > { %1770 = vperm.xlu1 %2124, %v1756_v44  }
  0xca   : > { %1760 = vperm.xlu0 %2123, %v1754_v45   ;;  %v2133_v45 = vld [vmem:[%s2498_s2 + $0x38] sm:$0xff]  }
  0xcc   : > { %1765 = vperm.xlu1 %2124, %v1755_v46   ;;  %v2134_v46 = vld [vmem:[%s2498_s2 + $0x48] sm:$0xff]  }
 0x108   : > { %v398_v59 = vpop.permute.xlu0 %397 }
 0x10a   : > { %v400_v61 = vpop.permute.xlu1 %399 }
 0x10b   : > { %v404_v62 = vsel %vm403_vm8, %v398_v59, %v400_v61  ;;  %v2137_v59 = vld [vmem:[%s2498_s2 + $0x58] sm:$0xff]  }
 0x10c   : > { %v402_v63 = vpop.permute.xlu0 %401  ;;  %v415_v18 = vsel %vm413_vm9, %v404_v62, 0  ;;  %v2140_v62 = vld [vmem:[%s2498_s2 + $0x80] sm:$0xff]  }
 0x10d   : > { %v405_v0 = vsel %vm403_vm8, %v400_v61, %v402_v63  ;;  %v2139_v61 = vld [vmem:[%s2498_s2 + $0x70] sm:$0xff]   ;;  %v2141_v63 = vld [vmem:[%s2498_s2 + $0x78] sm:$0xff]  }
 0x10e   : > { %v647_v1 = vpop.permute.xlu1 %646  ;;  %1984 = vmatprep.subr.msk.bf16.mxu0 %vm413_vm9, %v405_v0  ;;  %2093 = vmatprep.subr.msk.bf16.mxu1 %vm413_vm9, %v405_v0 }
 0x10f   : > { %435 = vmatpush1.bf16.msra.mxu0 %v415_v18  ;;  %2094 = vmatpush1.bf16.msra.mxu1 %v415_v18 }
 0x110   : > { %v649_v3 = vpop.permute.xlu0 %648  ;;  %1989 = vmatprep.subr.msk.bf16.mxu1 %vm413_vm9, %v491_v15  ;;  %v2142_v15 = vld [vmem:[%s2498_s2 + $0x88] sm:$0xff]  }
 0x111   : > { %v653_v5 = vsel %vm652_vm10, %v647_v1, %v649_v3 }
 0x112   : > { %v651_v6 = vpop.permute.xlu1 %650  ;;  %1985 = vmatmul.mubr.msk.bf16.vlgmr.msra.gmra.mxu0 %vm406_vm11, %v2125_v2  ;;  %1986 = vmatmul.mubr.msk.bf16.vlgmr.msra.gmra.mxu1 %vm406_vm11, %v2126_v19  ;;  %v662_v8 = vsel %vm413_vm9, %v653_v5, 0 }
 0x113   : > { %v654_v7 = vsel %vm652_vm10, %v649_v3, %v651_v6  ;;  %519 = vmatpush1.bf16.msra.mxu1 %v499_v4  ;;  %536 = vmatprep.mubr.bf16.mxu1 %v2169_v35 }
 0x114   : > { %2000 = vmatprep.subr.msk.bf16.mxu0 %vm413_vm9, %v654_v7  ;;  %v818_v9 = vpop.permute.xlu0 %817  ;;  %699 = vmatprep.mubr.bf16.mxu0 %v2169_v35 }
 0x115   : > { %682 = vmatpush1.bf16.msra.mxu0 %v662_v8 }
 0x116   : > { %v989_v10 = vpop.permute.xlu1 %988 }
 0x118   : > { %v822_v13 = vpop.permute.xlu0 %821 }
 0x11a   : > { %v820_v14 = vpop.permute.xlu1 %819  ;;  %1990 = vmatmul.mubr.msk.bf16.vlgmr.msra.gmra.mxu1 %vm406_vm11, %v2127_v11  ;;  %2001 = vmatmul.mubr.msk.bf16.vlgmr.msra.gmra.mxu0 %vm406_vm11, %v2128_v12 }
 0x11b   : > { %v824_v16 = vsel %vm823_vm12, %v818_v9, %v820_v14  ;;  %v825_v17 = vsel %vm823_vm12, %v820_v14, %v822_v13  ;;  %546 = vmatprep.mubr.bf16.mxu1 %v2169_v35  ;;  %709 = vmatprep.mubr.bf16.mxu0 %v2169_v35 }
 0x11c   : > { %v833_v20 = vsel %vm413_vm9, %v824_v16, 0  ;;  %v991_v21 = vpop.permute.xlu0 %990  ;;  %2011 = vmatprep.subr.msk.bf16.mxu1 %vm413_vm9, %v825_v17 }
 0x11d   : > { %v995_v22 = vsel %vm994_vm13, %v989_v10, %v991_v21  ;;  %853 = vmatpush1.bf16.msra.mxu1 %v833_v20 }
 0x11e   : > { %v993_v23 = vpop.permute.xlu1 %992  ;;  %v1004_v27 = vsel %vm413_vm9, %v995_v22, 0 }
 0x11f   : > { %v996_v26 = vsel %vm994_vm13, %v991_v21, %v993_v23 }
 0x120   : > { %2022 = vmatprep.subr.msk.bf16.mxu0 %vm413_vm9, %v996_v26  ;;  %v1160_v28 = vpop.permute.xlu0 %1159 }
 0x121   : > { %1024 = vmatpush1.bf16.msra.mxu0 %v1004_v27 }
 0x122   : > { %v1331_v29 = vpop.permute.xlu1 %1330  ;;  %1991 = vmatmul.mubr.msk.bf16.gmra.mxu1 %vm406_vm11, %v2129_v24  ;;  %2002 = vmatmul.mubr.msk.bf16.gmra.mxu0 %vm406_vm11, %v2130_v25 }
 0x123   : > { %870 = vmatprep.mubr.bf16.mxu1 %v2169_v35  ;;  %1041 = vmatprep.mubr.bf16.mxu0 %v2169_v35 }
 0x124   : > { %v1164_v30 = vpop.permute.xlu0 %1163 }
 0x126   : > { %v1162_v31 = vpop.permute.xlu1 %1161 }
 0x127   : > { %v1166_v34 = vsel %vm1165_vm14, %v1160_v28, %v1162_v31  ;;  %v1167_v36 = vsel %vm1165_vm14, %v1162_v31, %v1164_v30 }
 0x128   : > { %v1175_v37 = vsel %vm413_vm9, %v1166_v34, 0  ;;  %v1333_v38 = vpop.permute.xlu0 %1332  ;;  %2033 = vmatprep.subr.msk.bf16.mxu1 %vm413_vm9, %v1167_v36 }
 0x129   : > { %v1337_v39 = vsel %vm1336_vm15, %v1331_v29, %v1333_v38 }
 0x12a   : > { %v1346_v40 = vsel %vm413_vm9, %v1337_v39, 0  ;;  %v1335_v41 = vpop.permute.xlu1 %1334  ;;  %2012 = vmatmul.mubr.msk.bf16.vlgmr.msra.gmra.mxu1 %vm406_vm11, %v2131_v32  ;;  %2023 = vmatmul.mubr.msk.bf16.vlgmr.msra.gmra.mxu0 %vm406_vm11, %v2132_v33 }
 0x12b   : > { %v1338_v42 = vsel %vm1336_vm15, %v1333_v38, %v1335_v41  ;;  %1195 = vmatpush1.bf16.msra.mxu1 %v1175_v37  ;;  %880 = vmatprep.mubr.bf16.mxu1 %v2169_v35 }
 0x12c   : > { %2044 = vmatprep.subr.msk.bf16.mxu0 %vm413_vm9, %v1338_v42  ;;  %v1502_v43 = vpop.permute.xlu0 %1501  ;;  %1051 = vmatprep.mubr.bf16.mxu0 %v2169_v35 }
 0x12d   : > { %1366 = vmatpush1.bf16.msra.mxu0 %v1346_v40 }
 0x12e   : > { %v1673_v44 = vpop.permute.xlu1 %1672 }
 0x130   : > { %v1506_v47 = vpop.permute.xlu0 %1505 }
 0x132   : > { %2013 = vmatmul.mubr.msk.bf16.gmra.mxu1 %vm406_vm11, %v2133_v45  ;;  %2024 = vmatmul.mubr.msk.bf16.gmra.mxu0 %vm406_vm11, %v2134_v46  ;;  %v1504_v48 = vpop.permute.xlu1 %1503 }
 0x133   : > { %v1509_v49 = vsel %vm1507_vm1, %v1504_v48, %v1506_v47  ;;  %1212 = vmatprep.mubr.bf16.mxu1 %v2169_v35  ;;  %1383 = vmatprep.mubr.bf16.mxu0 %v2169_v35  ;;  %v1508_v51 = vsel %vm1507_vm1, %v1502_v43, %v1504_v48 }
 0x134   : > { %v1675_v50 = vpop.permute.xlu0 %1674  ;;  %2055 = vmatprep.subr.msk.bf16.mxu1 %vm413_vm9, %v1509_v49  ;;  %v1517_v57 = vsel %vm413_vm9, %v1508_v51, 0 }
 0x135   : > { %v1679_v52 = vsel %vm1678_vm2, %v1673_v44, %v1675_v50 }
 0x136   : > { %v1677_v53 = vpop.permute.xlu1 %1676  ;;  %v1688_v58 = vsel %vm413_vm9, %v1679_v52, 0 }
 0x137   : > { %v1680_v56 = vsel %vm1678_vm2, %v1675_v50, %v1677_v53 }
 0x138   : > { %2066 = vmatprep.subr.msk.bf16.mxu0 %vm413_vm9, %v1680_v56 }
 0x13a   : > { %2034 = vmatmul.mubr.msk.bf16.vlgmr.msra.gmra.mxu1 %vm406_vm11, %v2135_v54  ;;  %2045 = vmatmul.mubr.msk.bf16.vlgmr.msra.gmra.mxu0 %vm406_vm11, %v2136_v55 }
 0x13b   : > { %1537 = vmatpush1.bf16.msra.mxu1 %v1517_v57  ;;  %1708 = vmatpush1.bf16.msra.mxu0 %v1688_v58 }
 0x13c   : > { %1222 = vmatprep.mubr.bf16.mxu1 %v2169_v35  ;;  %1393 = vmatprep.mubr.bf16.mxu0 %v2169_v35 }
 0x142   : > { %2035 = vmatmul.mubr.msk.bf16.gmra.mxu1 %vm406_vm11, %v2137_v59  ;;  %2046 = vmatmul.mubr.msk.bf16.gmra.mxu0 %vm406_vm11, %v2138_v60 }
 0x143   : > { %1554 = vmatprep.mubr.bf16.mxu1 %v2169_v35  ;;  %1725 = vmatprep.mubr.bf16.mxu0 %v2169_v35 }
 0x14a   : > { %2056 = vmatmul.mubr.msk.bf16.vlgmr.msra.gmra.mxu1 %vm406_vm11, %v2139_v61  ;;  %2067 = vmatmul.mubr.msk.bf16.vlgmr.msra.gmra.mxu0 %vm406_vm11, %v2140_v62 }
 0x14b   : > { %1564 = vmatprep.mubr.bf16.mxu1 %v2169_v35  ;;  %1735 = vmatprep.mubr.bf16.mxu0 %v2169_v35 }
 0x152   : > { %2057 = vmatmul.mubr.msk.bf16.gmra.mxu1 %vm406_vm11, %v2141_v63  ;;  %2068 = vmatmul.mubr.msk.bf16.gmra.mxu0 %vm406_vm11, %v2142_v15 }
 0x1d2   : > { %v454_v0 = vpop.f32.mrf.mxu0  ;;  %v464_v1 = vpop.f32.mrf.mxu1 }
 0x1d4   : > { %v456_v18 = vpop.f32.mrf.mxu0  ;;  %v466_v2 = vpop.f32.mrf.mxu1 }
 0x1d6   : > { %v458_v19 = vpop.f32.mrf.mxu0  ;;  %v468_v3 = vpop.f32.mrf.mxu1 }
 0x1d8   : > { %v460_v4 = vpop.f32.mrf.mxu0  ;;  %v470_v35 = vpop.f32.mrf.mxu1 }
 0x1da   : > { %v538_v5 = vpop.f32.mrf.mxu1  ;;  %v701_v6 = vpop.f32.mrf.mxu0 }
 0x1db   : > { %v539_v57 = vadd.f32 %v538_v5, %v454_v0 }
 0x1dc   : > { %v540_v7 = vpop.f32.mrf.mxu1  ;;  %v703_v8 = vpop.f32.mrf.mxu0 }
 0x1dd   : > { %v541_v52 = vadd.f32 %v540_v7, %v456_v18 }
 0x1de   : > { %v542_v9 = vpop.f32.mrf.mxu1  ;;  %v705_v10 = vpop.f32.mrf.mxu0 }
 0x1df   : > { %v543_v48 = vadd.f32 %v542_v9, %v458_v19  ;;  %v721_v15 = vadd.f32 %v703_v8, %v541_v52 }
 0x1e0   : > { %v544_v11 = vpop.f32.mrf.mxu1  ;;  %v707_v12 = vpop.f32.mrf.mxu0 }
 0x1e1   : > { %v545_v47 = vadd.f32 %v544_v11, %v460_v4  ;;  %v722_v58 = vadd.f32 %v705_v10, %v543_v48 }
 0x1e2   : > { %v548_v13 = vpop.f32.mrf.mxu1  ;;  %v711_v14 = vpop.f32.mrf.mxu0 }
 0x1e3   : > { %v549_v51 = vadd.f32 %v548_v13, %v464_v1  ;;  %v723_v55 = vadd.f32 %v707_v12, %v545_v47  ;;  %v720_v1 = vadd.f32 %v701_v6, %v539_v57 }
 0x1e4   : > { %v550_v16 = vpop.f32.mrf.mxu1  ;;  %v713_v17 = vpop.f32.mrf.mxu0 }
 0x1e5   : > { %v551_v56 = vadd.f32 %v550_v16, %v466_v2  ;;  %v724_v61 = vadd.f32 %v711_v14, %v549_v51  ;;  %v1771_v51 = vpop.permute.xlu1 %1770 }
 0x1e6   : > { %v552_v20 = vpop.f32.mrf.mxu1  ;;  %v715_v21 = vpop.f32.mrf.mxu0 }
 0x1e7   : > { %v553_v62 = vadd.f32 %v552_v20, %v468_v3  ;;  %v725_v19 = vadd.f32 %v713_v17, %v551_v56 }
 0x1e8   : > { %v554_v22 = vpop.f32.mrf.mxu1  ;;  %v717_v23 = vpop.f32.mrf.mxu0 }
 0x1e9   : > { %v555_v9 = vadd.f32 %v554_v22, %v470_v35  ;;  %v726_v12 = vadd.f32 %v715_v21, %v553_v62 }
 0x1ea   : > { %v872_v24 = vpop.f32.mrf.mxu1  ;;  %v2462_v25 = vpop.f32.mrf.mxu0 }
 0x1eb   : > { %v891_v5 = vadd.f32 %v872_v24, %v720_v1  ;;  %v727_v3 = vadd.f32 %v717_v23, %v555_v9 }
 0x1ec   : > { %v874_v26 = vpop.f32.mrf.mxu1  ;;  %v1045_v27 = vpop.f32.mrf.mxu0 }
 0x1ed   : > { %v892_v18 = vadd.f32 %v874_v26, %v721_v15 }
 0x1ee   : > { %v876_v28 = vpop.f32.mrf.mxu1  ;;  %v1047_v29 = vpop.f32.mrf.mxu0 }
 0x1f0   : > { %v878_v30 = vpop.f32.mrf.mxu1  ;;  %v1049_v31 = vpop.f32.mrf.mxu0 }
 0x1f1   : > { %v894_v63 = vadd.f32 %v878_v30, %v723_v55  ;;  %v1063_v30 = vadd.f32 %v1045_v27, %v892_v18 }
 0x1f2   : > { %v882_v32 = vpop.f32.mrf.mxu1  ;;  %v1053_v33 = vpop.f32.mrf.mxu0 }
 0x1f3   : > { %v895_v11 = vadd.f32 %v882_v32, %v724_v61  ;;  %v1065_v2 = vadd.f32 %v1049_v31, %v894_v63  ;;  %v1062_v32 = vadd.f32 %v2462_v25, %v891_v5  ;;  %v1776_v61 = vpop.permute.xlu0 %1775 }
 0x1f4   : > { %v884_v34 = vpop.f32.mrf.mxu1  ;;  %v1055_v36 = vpop.f32.mrf.mxu0 }
 0x1f5   : > { %v896_v0 = vadd.f32 %v884_v34, %v725_v19  ;;  %v1066_v20 = vadd.f32 %v1053_v33, %v895_v11  ;;  %v1766_v11 = vpop.permute.xlu1 %1765 }
 0x1f6   : > { %v886_v37 = vpop.f32.mrf.mxu1  ;;  %v1057_v38 = vpop.f32.mrf.mxu0 }
 0x1f7   : > { %v897_v8 = vadd.f32 %v886_v37, %v726_v12  ;;  %v1067_v22 = vadd.f32 %v1055_v36, %v896_v0 }
 0x1f8   : > { %v888_v39 = vpop.f32.mrf.mxu1  ;;  %v2464_v40 = vpop.f32.mrf.mxu0 }
 0x1f9   : > { %v898_v6 = vadd.f32 %v888_v39, %v727_v3  ;;  %v1068_v24 = vadd.f32 %v1057_v38, %v897_v8 }
 0x1fa   : > { %v1214_v41 = vpop.f32.mrf.mxu1  ;;  %v2466_v42 = vpop.f32.mrf.mxu0 }
 0x1fb   : > { %2503 = vst [vmem:[#allocation2_spill] sm:$0xff] %v2466_v42  ;;  %v893_v42 = vadd.f32 %v876_v28, %v722_v58  ;;  %v1233_v48 = vadd.f32 %v1214_v41, %v1062_v32  ;;  %v1069_v27 = vadd.f32 %v2464_v40, %v898_v6 }
 0x1fc   : > { %v1216_v43 = vpop.f32.mrf.mxu1  ;;  %v2468_v44 = vpop.f32.mrf.mxu0 }
 0x1fd   : > { %2504 = vst [vmem:[#allocation3_spill] sm:$0xff] %v2468_v44  ;;  %v1064_v10 = vadd.f32 %v1047_v29, %v893_v42  ;;  %v1234_v21 = vadd.f32 %v1216_v43, %v1063_v30 }
 0x1fe   : > { %v1218_v45 = vpop.f32.mrf.mxu1  ;;  %v1389_v46 = vpop.f32.mrf.mxu0 }
 0x1ff   : > { %v1235_v47 = vadd.f32 %v1218_v45, %v1064_v10 }
 0x200   : > { %v1220_v49 = vpop.f32.mrf.mxu1  ;;  %v1391_v50 = vpop.f32.mrf.mxu0 }
 0x201   : > { %v1236_v28 = vadd.f32 %v1220_v49, %v1065_v2  ;;  %v1406_v23 = vadd.f32 %v1389_v46, %v1235_v47  ;;  %v1761_v47 = vpop.permute.xlu0 %1760 }
 0x202   : > { %v1224_v53 = vpop.f32.mrf.mxu1  ;;  %v1395_v54 = vpop.f32.mrf.mxu0 }
 0x203   : > { %v1237_v26 = vadd.f32 %v1224_v53, %v1066_v20  ;;  %v1407_v29 = vadd.f32 %v1391_v50, %v1236_v28  ;;  %v2506_v50 = vld [vmem:[#allocation2_spill] sm:$0xff] }
 0x204   : > { %v1226_v59 = vpop.f32.mrf.mxu1  ;;  %v1397_v60 = vpop.f32.mrf.mxu0  ;;  %v2505_v39 = vld [vmem:[#allocation3_spill] sm:$0xff]  ;;  %v1404_v57 = vadd.f32 %v2506_v50, %v1233_v48 }
 0x205   : > { %v1238_v42 = vadd.f32 %v1226_v59, %v1067_v22  ;;  %v1408_v45 = vadd.f32 %v1395_v54, %v1237_v26  ;;  %v1405_v52 = vadd.f32 %v2505_v39, %v1234_v21  ;;  %v1813_v39 = vld [vmem:[%s2501_s5 + $0x8] sm:$0x3] }
 0x206   : > { %v1228_v44 = vpop.f32.mrf.mxu1  ;;  %v1399_v4 = vpop.f32.mrf.mxu0 }
 0x207   : > { %v1239_v49 = vadd.f32 %v1228_v44, %v1068_v24  ;;  %v1409_v55 = vadd.f32 %v1397_v60, %v1238_v42  ;;  %v1810_v42 = vld [vmem:[%s2500_s4] sm:$0xff] }
 0x208   : > { %v1230_v7 = vpop.f32.mrf.mxu1  ;;  %v1401_v13 = vpop.f32.mrf.mxu0  ;;  %2090 = vmatprep.mubr.msk.f32.mxu1 %vm1294_vm5, %v1810_v42 }
 0x209   : > { %v1240_v56 = vadd.f32 %v1230_v7, %v1069_v27  ;;  %v1410_v59 = vadd.f32 %v1399_v4, %v1239_v49 }
 0x20a   : > { %v1727_v16 = vpop.f32.mrf.mxu0  ;;  %v1556_v14 = vpop.f32.mrf.mxu1 }
 0x20b   : > { %v1575_v62 = vadd.f32 %v1556_v14, %v1404_v57  ;;  %v1411_v9 = vadd.f32 %v1401_v13, %v1240_v56 }
 0x20c   : > { %v1558_v17 = vpop.f32.mrf.mxu1  ;;  %v1729_v35 = vpop.f32.mrf.mxu0 }
 0x20d   : > { %v1576_v41 = vadd.f32 %v1558_v17, %v1405_v52  ;;  %v1746_v4 = vadd.f32 %v1727_v16, %v1575_v62 }
 0x20e   : > { %v1731_v31 = vpop.f32.mrf.mxu0  ;;  %v1560_v34 = vpop.f32.mrf.mxu1 }
 0x20f   : > { %v1577_v53 = vadd.f32 %v1560_v34, %v1406_v23  ;;  %v1747_v7 = vadd.f32 %v1729_v35, %v1576_v41  ;;  %v1778_v26 = vadd.f32 %v1761_v47, %v1746_v4 }
 0x210   : > { %v1562_v33 = vpop.f32.mrf.mxu1  ;;  %v1733_v37 = vpop.f32.mrf.mxu0 }
 0x211   : > { %v1578_v36 = vadd.f32 %v1562_v33, %v1407_v29  ;;  %v1748_v63 = vadd.f32 %v1731_v31, %v1577_v53  ;;  %v1779_v17 = vadd.f32 %v1761_v47, %v1747_v7  ;;  %v1786_v16 = vmax.f32 %v1778_v26, 0.0  ;;  %v1812_v53 = vld [vmem:[%s2501_s5] sm:$0xff] }
 0x212   : > { %v1566_v25 = vpop.f32.mrf.mxu1  ;;  %v1737_v43 = vpop.f32.mrf.mxu0 }
 0x213   : > { %v1579_v38 = vadd.f32 %v1566_v25, %v1408_v45  ;;  %v1749_v40 = vadd.f32 %v1733_v37, %v1578_v36  ;;  %v1780_v3 = vadd.f32 %v1766_v11, %v1748_v63  ;;  %v1787_v31 = vmax.f32 %v1779_v17, 0.0  ;;  %v1811_v36 = vld [vmem:[%s2500_s4 + $0x8] sm:$0x3] }
 0x214   : > { %v1568_v46 = vpop.f32.mrf.mxu1  ;;  %v1739_v58 = vpop.f32.mrf.mxu0 }
 0x215   : > { %v1750_v54 = vadd.f32 %v1737_v43, %v1579_v38  ;;  %v1580_v44 = vadd.f32 %v1568_v46, %v1409_v55  ;;  %v1781_v2 = vadd.f32 %v1766_v11, %v1749_v40  ;;  %v1788_v32 = vmax.f32 %v1780_v3, 0.0 }
 0x216   : > { %v1570_v15 = vpop.f32.mrf.mxu1  ;;  %v1741_v19 = vpop.f32.mrf.mxu0  ;;  %v1794_v29 = vadd.f32 %v1787_v31, %v1786_v16 }
 0x217   : > { %v1782_v1 = vadd.f32 %v1771_v51, %v1750_v54  ;;  %v1751_v60 = vadd.f32 %v1739_v58, %v1580_v44  ;;  %v1581_v18 = vadd.f32 %v1570_v15, %v1410_v59  ;;  %v1789_v13 = vmax.f32 %v1781_v2, 0.0 }
 0x218   : > { %v1572_v12 = vpop.f32.mrf.mxu1  ;;  %v1743_v20 = vpop.f32.mrf.mxu0 }
 0x219   : > { %v1783_v0 = vadd.f32 %v1771_v51, %v1751_v60  ;;  %v1752_v5 = vadd.f32 %v1741_v19, %v1581_v18  ;;  %v1582_v10 = vadd.f32 %v1572_v12, %v1411_v9  ;;  %v1790_v8 = vmax.f32 %v1782_v1, 0.0 }
 0x21a   : > { %v1797_v24 = vadd.f32 %v1789_v13, %v1788_v32 }
 0x21b   : > { %v1791_v28 = vmax.f32 %v1783_v0, 0.0  ;;  %v1784_v14 = vadd.f32 %v1776_v61, %v1752_v5  ;;  %v1753_v30 = vadd.f32 %v1743_v20, %v1582_v10 }
 0x21d   : > { %v1785_v22 = vadd.f32 %v1776_v61, %v1753_v30  ;;  %v1800_v6 = vadd.f32 %v1791_v28, %v1790_v8  ;;  %v1792_v35 = vmax.f32 %v1784_v14, 0.0 }
 0x21f   : > { %v1793_v21 = vmax.f32 %v1785_v22, 0.0  ;;  %1801 = vadd.xlane.f32.xlu0 %v1800_v6 }
 0x221   : > { %v1803_v34 = vadd.f32 %v1793_v21, %v1792_v35 }
 0x223   : > { %1804 = vadd.xlane.f32.xlu1 %v1803_v34  ;;  %1798 = vadd.xlane.f32.xlu0 %v1797_v24 }
 0x227   : > { %1795 = vadd.xlane.f32.xlu1 %v1794_v29 }
 0x2a8   : > { %v1802_v48 = vpop.xlane.xlu0 %1801 }
 0x2a9   : > { %v1808_v27 = vmul.f32 0.00390625, %v1802_v48 }
 0x2ac   : > { %v1805_v23 = vpop.xlane.xlu1 %1804  ;;  %v1799_v37 = vpop.xlane.xlu0 %1798 }
 0x2ad   : > { %v1809_v33 = vmul.f32 0.00390625, %v1805_v23  ;;  %v1807_v49 = vmul.f32 0.00390625, %v1799_v37 }
 0x2af   : > { %2082 = vmatprep.subr.mxu1 %v1809_v33 }
 0x2b0   : > { %2083 = vmatpush3.msra.mxu1 %v1809_v33  ;;  %v1796_v45 = vpop.xlane.xlu1 %1795 }
 0x2b1   : > { %2084 = vmatprep.subr.mxu1 %v1808_v27  ;;  %v1806_v51 = vmul.f32 0.00390625, %v1796_v45 }
 0x2b2   : > { %2085 = vmatpush3.msra.mxu1 %v1808_v27 }
 0x2b3   : > { %2086 = vmatprep.subr.mxu1 %v1807_v49 }
 0x2b4   : > { %2087 = vmatpush3.msra.mxu1 %v1807_v49 }
 0x2b5   : > { %2088 = vmatprep.subr.mxu1 %v1806_v51 }
 0x2b6   : > { %2089 = vmatpush3.msra.mxu1 %v1806_v51 }
 0x2b7   : > { %2091 = vmatmul.mubr.msk.f32.vlgmr.msra.gmra.mxu1 %vm1294_vm5, %v1811_v36 }
 0x377   : > { %v2092_v52 = vpop.f32.mrf.mxu1 }
 0x378   : > { %v1893_v25 = vadd.f32 %v2092_v52, %v1813_v39 }
 0x379   : > { %v1887_v43 = vpop.f32.mrf.mxu1 }
 0x37a   : > { %v2072_v55 = vmul.f32 -1.442695, %v1893_v25  ;;  %v1888_v56 = vadd.f32 %v1887_v43, %v1812_v53 }
 0x37c   : > { %2143 = vpow2.f32 %v2072_v55  ;;  %v2071_v38 = vmul.f32 -1.442695, %v1888_v56 }
 0x37e   : > { %2145 = vpow2.f32 %v2071_v38 }
 0x389   : > { %v2144_v50 = vpop.eup %2143 }
 0x38a   : > { %v1903_v57 = vadd.f32 1.0, %v2144_v50 }
 0x38b   : > { %v2146_v41 = vpop.eup %2145 }
 0x38c   : > { %2147 = vrcp.f32 %v1903_v57  ;;  %v1902_v46 = vadd.f32 1.0, %v2146_v41 }
 0x38e   : > { %2149 = vrcp.f32 %v1902_v46 }
 0x399   : > { %v2148_v58 = vpop.eup %2147 }
 0x39a   : > { %1911 = vst.msk [vmem:[%s251_s28 + $0x8] sm:$0x3] %vm1910_vm3, %v2148_v58 }
 0x39b   : > { %v2150_v59 = vpop.eup %2149 }
 0x39c   : > { %1909 = vst.msk [vmem:[%s251_s28] sm:$0xff] %vm361_vm0, %v2150_v59 }
 0x39d PF: > { %s16_s21 = sadd.s32 1, %s2157_s21  }
 0x39e   : > { %p13_p4 = scmp.ge.s32.totalorder %s16_s21, 4  }
 0x3a0   :  { %15 = sbr.rel (!%p13_p4) target bundleno = 1 (0x1), region = 90 }

</bundles_post_ra>
